<compile_context>
chip_gen: v7x
topology: tpu7x:2x2x1
jax: 0.10.0
libtpu: 0.0.40
codegen_flags: <defaults>
</compile_context>

<pallas_src>
import numpy as np
import jax
import jax.numpy as jnp
from jax import lax
from jax.experimental import pallas as pl
from jax.experimental.pallas import tpu as pltpu

jax.config.update("jax_default_matmul_precision", "highest")


def _sigmoid(x):
    return 1.0 / (1.0 + jnp.exp(-x))


def _lstm_deconv_kernel(x_ref, wih_ref, whhT_ref, bg_ref, wlin_ref,
                        m1_ref, b1_ref, m2_ref, scal_ref,
                        o_ref, yb_scr):
    # x_ref    : (L, B, 1)   time-major input
    # wih_ref  : (2, 4H)     input->gate weights   (row 0 = fwd, row 1 = bwd)
    # whhT_ref : (2, H, 4H)  hidden->gate weights, pre-transposed
    # bg_ref   : (2, 4H)     combined gate biases (b_ih + b_hh)
    # wlin_ref : (2, H)      Linear(2H->1) weights split per direction
    # m1_ref   : (L, 1, C1)  ConvTranspose1d #1 as a dense (L, 5*L3) matrix
    # b1_ref   : (1, C1)     ConvTranspose1d #1 bias, repeated per position
    # m2_ref   : (C1, C2)    ConvTranspose1d #2 as a dense (5*L3, 4L) matrix
    # scal_ref : (1, 2)      [linear bias, deconv2 bias]
    # o_ref    : (B, C2)     final output (== (B, 1, 4L) with channel squeezed)
    # yb_scr   : (L, B, 1)   scratch: backward-direction linear contribution
    f32 = jnp.float32
    L, B, _ = x_ref.shape
    H = wlin_ref.shape[1]
    C1 = m1_ref.shape[2]

    def make_step(d):
        wih_d = wih_ref[d:d + 1, :]        # (1, 4H)   loaded once (hoisted)
        whh_d = whhT_ref[d]                # (H, 4H)
        bg_d = bg_ref[d:d + 1, :]          # (1, 4H)

        def step(h, c, x_t):               # h, c: (B, H); x_t: (B, 1)
            gates = (x_t * wih_d
                     + jnp.dot(h, whh_d, preferred_element_type=f32)
                     + bg_d)                                   # (B, 4H)
            i_g = _sigmoid(gates[:, 0:H])
            f_g = _sigmoid(gates[:, H:2 * H])
            g_g = jnp.tanh(gates[:, 2 * H:3 * H])
            o_g = _sigmoid(gates[:, 3 * H:4 * H])
            c_new = f_g * c + i_g * g_g
            h_new = o_g * jnp.tanh(c_new)
            return h_new, c_new

        return step

    step_fwd = make_step(0)
    step_bwd = make_step(1)
    wlin_f = wlin_ref[0:1, :]              # (1, H)
    wlin_b = wlin_ref[1:2, :]              # (1, H)
    b_lin = scal_ref[0:1, 0:1]             # (1, 1)
    b_dc2 = scal_ref[0:1, 1:2]             # (1, 1)

    # ---- backward direction: store its Linear contribution per time step ----
    def bwd_body(i, carry):
        h, c = carry
        t = L - 1 - i
        h, c = step_bwd(h, c, x_ref[t])
        yb_scr[t] = jnp.sum(h * wlin_b, axis=1, keepdims=True)     # (B, 1)
        return (h, c)

    lax.fori_loop(0, L, bwd_body,
                  (jnp.zeros((B, H), f32), jnp.zeros((B, H), f32)))

    # ---- forward direction fused with Linear + ReLU and the deconv1
    #      contraction:  acc[b, :] += relu(a2[b, t]) * M1[t, :]  --------------
    def fwd_body(t, carry):
        h, c, acc = carry
        h, c = step_fwd(h, c, x_ref[t])
        y_t = (jnp.sum(h * wlin_f, axis=1, keepdims=True)
               + yb_scr[t] + b_lin)                                 # (B, 1)
        a2_t = jnp.maximum(y_t, 0.0)
        acc = acc + a2_t * m1_ref[t]                                # (B, C1)
        return (h, c, acc)

    _, _, acc1 = lax.fori_loop(
        0, L, fwd_body,
        (jnp.zeros((B, H), f32), jnp.zeros((B, H), f32),
         jnp.zeros((B, C1), f32)))

    # ---- deconv1 bias + ReLU, then deconv2 as a single MXU matmul -----------
    h1 = jnp.maximum(acc1 + b1_ref[...], 0.0)                       # (B, C1)
    out = jnp.dot(h1, m2_ref[...], preferred_element_type=f32) + b_dc2
    o_ref[...] = out.astype(o_ref.dtype)


def _deconv_matrix(w, l_in, stride, padding):
    """Express ConvTranspose1d(w) as a dense (C_in*L_in, C_out*L_out) matrix."""
    c_in, c_out, k_sz = w.shape
    l_out = (l_in - 1) * stride - 2 * padding + k_sz
    rows, cols, flat = [], [], []
    for ci in range(c_in):
        for co in range(c_out):
            for t in range(l_in):
                for k in range(k_sz):
                    j = stride * t - padding + k
                    if 0 <= j < l_out:
                        rows.append(ci * l_in + t)
                        cols.append(co * l_out + j)
                        flat.append((ci * c_out + co) * k_sz + k)
    m = jnp.zeros((c_in * l_in, c_out * l_out), jnp.float32)
    m = m.at[np.asarray(rows), np.asarray(cols)].add(
        w.astype(jnp.float32).reshape(-1)[np.asarray(flat)])
    return m, l_out


@jax.jit
def lstm_forward(inputs, params):
    """Forward pass of the PyTorch `lstm` module. inputs: (B, 1, L) float32."""
    B, c_in, L = inputs.shape
    assert c_in == 1
    H = params["w_hh_f"].shape[1]

    # ---- pure weight/layout preprocessing (traced once under jit) ----------
    x3 = jnp.transpose(inputs.astype(jnp.float32), (2, 0, 1))          # (L,B,1)
    wih = jnp.stack([params["w_ih_f"][:, 0], params["w_ih_b"][:, 0]])  # (2,4H)
    whhT = jnp.stack([params["w_hh_f"].T, params["w_hh_b"].T])         # (2,H,4H)
    bg = jnp.stack([params["b_ih_f"] + params["b_hh_f"],
                    params["b_ih_b"] + params["b_hh_b"]])              # (2,4H)
    wlin = jnp.stack([params["w_lin"][0, :H], params["w_lin"][0, H:]]) # (2,H)

    m1, l3 = _deconv_matrix(params["w_dc1"], L, stride=2, padding=2)
    m2, _ = _deconv_matrix(params["w_dc2"], l3, stride=2, padding=1)
    C1 = m1.shape[1]                      # 5 * (2L - 1)
    C2 = m2.shape[1]                      # 4L
    m1 = m1.reshape(L, 1, C1)
    b1r = jnp.repeat(params["b_dc1"].astype(jnp.float32), l3)[None, :]  # (1,C1)
    scal = jnp.stack([params["b_lin"][0],
                      params["b_dc2"][0]]).astype(jnp.float32).reshape(1, 2)

    out = pl.pallas_call(
        _lstm_deconv_kernel,
        out_shape=jax.ShapeDtypeStruct((B, C2), jnp.float32),
        grid_spec=pltpu.PrefetchScalarGridSpec(
            num_scalar_prefetch=0,
            grid=(1,),
            in_specs=[
                pl.BlockSpec((L, B, 1), lambda i: (0, 0, 0)),       # x
                pl.BlockSpec((2, 4 * H), lambda i: (0, 0)),         # wih
                pl.BlockSpec((2, H, 4 * H), lambda i: (0, 0, 0)),   # whhT
                pl.BlockSpec((2, 4 * H), lambda i: (0, 0)),         # bg
                pl.BlockSpec((2, H), lambda i: (0, 0)),             # wlin
                pl.BlockSpec((L, 1, C1), lambda i: (0, 0, 0)),      # m1
                pl.BlockSpec((1, C1), lambda i: (0, 0)),            # b1
                pl.BlockSpec((C1, C2), lambda i: (0, 0)),           # m2
                pl.BlockSpec((1, 2), lambda i: (0, 0)),             # scalars
            ],
            out_specs=pl.BlockSpec((B, C2), lambda i: (0, 0)),
            scratch_shapes=[pltpu.VMEM((L, B, 1), jnp.float32)],
        ),
        compiler_params=pltpu.CompilerParams(
            dimension_semantics=("arbitrary",),
            vmem_limit_bytes=32 * 1024 * 1024,
        ),
    )(x3, wih, whhT, bg, wlin, m1, b1r, m2, scal)

    return out.reshape(B, 1, C2)


# ----------------------------- pure-JAX reference ----------------------------
def _ref_deconv1d(x, w, b, stride, padding):
    bn, c_in, l_in = x.shape
    _, c_out, k_sz = w.shape
    l_full = stride * (l_in - 1) + k_sz
    l_out = l_full - 2 * padding
    y = jnp.zeros((bn, c_out, l_full), jnp.float32)
    for k in range(k_sz):
        contrib = jnp.einsum("bit,io->bot", x, w[:, :, k])
        y = y.at[:, :, k:k + stride * (l_in - 1) + 1:stride].add(contrib)
    return y[:, :, padding:padding + l_out] + b[None, :, None]


def reference_forward(inputs, p):
    B, _, L = inputs.shape
    H = p["w_hh_f"].shape[1]
    x_tb = jnp.transpose(inputs.astype(jnp.float32), (2, 0, 1))     # (L, B, 1)

    def run(x_seq, w_ih, w_hh, b):
        def step(carry, x_t):
            h, c = carry
            gates = x_t @ w_ih.T + h @ w_hh.T + b
            i = _sigmoid(gates[:, :H])
            f = _sigmoid(gates[:, H:2 * H])
            g = jnp.tanh(gates[:, 2 * H:3 * H])
            o = _sigmoid(gates[:, 3 * H:])
            c = f * c + i * g
            h = o * jnp.tanh(c)
            return (h, c), h
        init = (jnp.zeros((B, H), jnp.float32), jnp.zeros((B, H), jnp.float32))
        _, hs = lax.scan(step, init, x_seq)
        return hs                                                    # (L, B, H)

    hs_f = run(x_tb, p["w_ih_f"], p["w_hh_f"], p["b_ih_f"] + p["b_hh_f"])
    hs_b = run(x_tb[::-1], p["w_ih_b"], p["w_hh_b"],
               p["b_ih_b"] + p["b_hh_b"])[::-1]
    a1 = jnp.concatenate([hs_f, hs_b], axis=-1)                      # (L, B, 2H)
    a2 = a1 @ p["w_lin"].T + p["b_lin"]                              # (L, B, 1)
    a2 = jnp.maximum(jnp.transpose(a2, (1, 2, 0)), 0.0)              # (B, 1, L)
    a3 = jnp.maximum(_ref_deconv1d(a2, p["w_dc1"], p["b_dc1"], 2, 2), 0.0)
    return _ref_deconv1d(a3, p["w_dc2"], p["b_dc2"], 2, 1)


if __name__ == "__main__":
    key = jax.random.PRNGKey(0)
    B, L, H = 2, 16, 20
    ks = jax.random.split(key, 15)

    def rn(k, shape, scale=0.3):
        return (scale * jax.random.normal(k, shape)).astype(jnp.float32)

    params = {
        "w_ih_f": rn(ks[0], (4 * H, 1)),
        "w_hh_f": rn(ks[1], (4 * H, H)),
        "b_ih_f": rn(ks[2], (4 * H,)),
        "b_hh_f": rn(ks[3], (4 * H,)),
        "w_ih_b": rn(ks[4], (4 * H, 1)),
        "w_hh_b": rn(ks[5], (4 * H, H)),
        "b_ih_b": rn(ks[6], (4 * H,)),
        "b_hh_b": rn(ks[7], (4 * H,)),
        "w_lin": rn(ks[8], (1, 2 * H)),
        "b_lin": rn(ks[9], (1,)),
        "w_dc1": rn(ks[10], (1, 5, 5)),
        "b_dc1": rn(ks[11], (5,)),
        "w_dc2": rn(ks[12], (5, 1, 6)),
        "b_dc2": rn(ks[13], (1,)),
    }
    inputs = rn(ks[14], (B, 1, L), scale=1.0)

    out = jax.block_until_ready(lstm_forward(inputs, params))
    assert out.shape == (B, 1, 4 * L), out.shape

    ref = jax.block_until_ready(reference_forward(inputs, params))
    err = float(jnp.max(jnp.abs(out - ref)))
    assert err < 2e-3, f"max |err| = {err}"

    print("KERNEL_OK")
</pallas_src>

<mosaic_0001>
module attributes {stable_mosaic.version = 11 : i64} {
  func.func @_lstm_deconv_kernel(%arg0: i32, %arg1: memref<16x2x1xf32, #tpu.memory_space<vmem>>, %arg2: memref<2x80xf32, #tpu.memory_space<vmem>>, %arg3: memref<2x20x80xf32, #tpu.memory_space<vmem>>, %arg4: memref<2x80xf32, #tpu.memory_space<vmem>>, %arg5: memref<2x20xf32, #tpu.memory_space<vmem>>, %arg6: memref<16x1x155xf32, #tpu.memory_space<vmem>>, %arg7: memref<1x155xf32, #tpu.memory_space<vmem>>, %arg8: memref<155x64xf32, #tpu.memory_space<vmem>>, %arg9: memref<1x2xf32, #tpu.memory_space<vmem>>, %arg10: memref<2x64xf32, #tpu.memory_space<vmem>>, %arg11: memref<16x2x1xf32, #tpu.memory_space<vmem>>) attributes {dimension_semantics = [#tpu.dimension_semantics<arbitrary>], iteration_bounds = array<i64: 1>, scalar_prefetch = 0 : i64, scratch_operands = 1 : i64, tpu.core_type = #tpu.core_type<tc>, window_params = [{pipeline_mode = #tpu.pipeline_mode<synchronous>, transform_indices = @transform_0, window_bounds = array<i64: 16, 2, 1>}, {pipeline_mode = #tpu.pipeline_mode<synchronous>, transform_indices = @transform_1, window_bounds = array<i64: 2, 80>}, {pipeline_mode = #tpu.pipeline_mode<synchronous>, transform_indices = @transform_2, window_bounds = array<i64: 2, 20, 80>}, {pipeline_mode = #tpu.pipeline_mode<synchronous>, transform_indices = @transform_3, window_bounds = array<i64: 2, 80>}, {pipeline_mode = #tpu.pipeline_mode<synchronous>, transform_indices = @transform_4, window_bounds = array<i64: 2, 20>}, {pipeline_mode = #tpu.pipeline_mode<synchronous>, transform_indices = @transform_5, window_bounds = array<i64: 16, 1, 155>}, {pipeline_mode = #tpu.pipeline_mode<synchronous>, transform_indices = @transform_6, window_bounds = array<i64: 1, 155>}, {pipeline_mode = #tpu.pipeline_mode<synchronous>, transform_indices = @transform_7, window_bounds = array<i64: 155, 64>}, {pipeline_mode = #tpu.pipeline_mode<synchronous>, transform_indices = @transform_8, window_bounds = array<i64: 1, 2>}, {pipeline_mode = #tpu.pipeline_mode<synchronous>, transform_indices = @transform_9, window_bounds = array<i64: 2, 64>}]} {
    %c0 = arith.constant 0 : index
    %c0_0 = arith.constant 0 : index
    %0 = vector.load %arg2[%c0, %c0_0] : memref<2x80xf32, #tpu.memory_space<vmem>>, vector<1x80xf32>
    %c0_1 = arith.constant 0 : index
    %c0_2 = arith.constant 0 : index
    %c0_3 = arith.constant 0 : index
    %1 = vector.load %arg3[%c0_1, %c0_2, %c0_3] : memref<2x20x80xf32, #tpu.memory_space<vmem>>, vector<1x20x80xf32>
    %2 = vector.shape_cast %1 : vector<1x20x80xf32> to vector<20x80xf32>
    %c0_4 = arith.constant 0 : index
    %c0_5 = arith.constant 0 : index
    %3 = vector.load %arg4[%c0_4, %c0_5] : memref<2x80xf32, #tpu.memory_space<vmem>>, vector<1x80xf32>
    %c1 = arith.constant 1 : index
    %c0_6 = arith.constant 0 : index
    %4 = vector.load %arg2[%c1, %c0_6] : memref<2x80xf32, #tpu.memory_space<vmem>>, vector<1x80xf32>
    %c1_7 = arith.constant 1 : index
    %c0_8 = arith.constant 0 : index
    %c0_9 = arith.constant 0 : index
    %5 = vector.load %arg3[%c1_7, %c0_8, %c0_9] : memref<2x20x80xf32, #tpu.memory_space<vmem>>, vector<1x20x80xf32>
    %6 = vector.shape_cast %5 : vector<1x20x80xf32> to vector<20x80xf32>
    %c1_10 = arith.constant 1 : index
    %c0_11 = arith.constant 0 : index
    %7 = vector.load %arg4[%c1_10, %c0_11] : memref<2x80xf32, #tpu.memory_space<vmem>>, vector<1x80xf32>
    %c0_12 = arith.constant 0 : index
    %c0_13 = arith.constant 0 : index
    %8 = vector.load %arg5[%c0_12, %c0_13] : memref<2x20xf32, #tpu.memory_space<vmem>>, vector<1x20xf32>
    %c1_14 = arith.constant 1 : index
    %c0_15 = arith.constant 0 : index
    %9 = vector.load %arg5[%c1_14, %c0_15] : memref<2x20xf32, #tpu.memory_space<vmem>>, vector<1x20xf32>
    %c0_16 = arith.constant 0 : index
    %c0_17 = arith.constant 0 : index
    %10 = vector.load %arg9[%c0_16, %c0_17] : memref<1x2xf32, #tpu.memory_space<vmem>>, vector<1x1xf32>
    %c0_18 = arith.constant 0 : index
    %c1_19 = arith.constant 1 : index
    %11 = vector.load %arg9[%c0_18, %c1_19] : memref<1x2xf32, #tpu.memory_space<vmem>>, vector<1x1xf32>
    %cst = arith.constant 0.000000e+00 : f32
    %12 = vector.broadcast %cst : f32 to vector<2x20xf32>
    %cst_20 = arith.constant 0.000000e+00 : f32
    %13 = vector.broadcast %cst_20 : f32 to vector<2x20xf32>
    %c0_i32 = arith.constant 0 : i32
    %c16_i32 = arith.constant 16 : i32
    %14 = arith.addi %c0_i32, %c16_i32 : i32
    %c1_i32 = arith.constant 1 : i32
    %15:2 = scf.for %arg12 = %c0_i32 to %14 step %c1_i32 iter_args(%arg13 = %12, %arg14 = %13) -> (vector<2x20xf32>, vector<2x20xf32>)  : i32 {
      %c15_i32 = arith.constant 15 : i32
      %31 = arith.subi %c15_i32, %arg12 : i32
      %32 = arith.index_cast %31 : i32 to index
      %c0_37 = arith.constant 0 : index
      %c0_38 = arith.constant 0 : index
      %33 = vector.load %arg1[%32, %c0_37, %c0_38] : memref<16x2x1xf32, #tpu.memory_space<vmem>>, vector<1x2x1xf32>
      %34 = vector.shape_cast %33 : vector<1x2x1xf32> to vector<2x1xf32>
      %35 = vector.broadcast %34 : vector<2x1xf32> to vector<2x80xf32>
      %36 = vector.broadcast %4 : vector<1x80xf32> to vector<2x80xf32>
      %37 = arith.mulf %35, %36 : vector<2x80xf32>
      %cst_39 = arith.constant dense<0.000000e+00> : vector<2x80xf32>
      %38 = tpu.matmul %arg13, %6, %cst_39 {dimension_numbers = #tpu.dot_dimension_numbers<[1], [0], [0], [1], [0, 0, 1, 1], [], []>, precision = #tpu.contract_precision<fp32>} : vector<2x20xf32>, vector<20x80xf32>, vector<2x80xf32> -> vector<2x80xf32>
      %39 = arith.addf %37, %38 : vector<2x80xf32>
      %40 = vector.broadcast %7 : vector<1x80xf32> to vector<2x80xf32>
      %41 = arith.addf %39, %40 : vector<2x80xf32>
      %42 = vector.extract_strided_slice %41 {offsets = [0, 0], sizes = [2, 20], strides = [1, 1]} : vector<2x80xf32> to vector<2x20xf32>
      %cst_40 = arith.constant 0.000000e+00 : f32
      %43 = vector.broadcast %cst_40 : f32 to vector<2x20xf32>
      %44 = arith.subf %43, %42 : vector<2x20xf32>
      %45 = math.exp %44 : vector<2x20xf32>
      %cst_41 = arith.constant 1.000000e+00 : f32
      %46 = vector.broadcast %cst_41 : f32 to vector<2x20xf32>
      %47 = arith.addf %46, %45 : vector<2x20xf32>
      %cst_42 = arith.constant 1.000000e+00 : f32
      %48 = vector.broadcast %cst_42 : f32 to vector<2x20xf32>
      %49 = arith.divf %48, %47 : vector<2x20xf32>
      %50 = vector.extract_strided_slice %41 {offsets = [0, 20], sizes = [2, 20], strides = [1, 1]} : vector<2x80xf32> to vector<2x20xf32>
      %cst_43 = arith.constant 0.000000e+00 : f32
      %51 = vector.broadcast %cst_43 : f32 to vector<2x20xf32>
      %52 = arith.subf %51, %50 : vector<2x20xf32>
      %53 = math.exp %52 : vector<2x20xf32>
      %cst_44 = arith.constant 1.000000e+00 : f32
      %54 = vector.broadcast %cst_44 : f32 to vector<2x20xf32>
      %55 = arith.addf %54, %53 : vector<2x20xf32>
      %cst_45 = arith.constant 1.000000e+00 : f32
      %56 = vector.broadcast %cst_45 : f32 to vector<2x20xf32>
      %57 = arith.divf %56, %55 : vector<2x20xf32>
      %58 = vector.extract_strided_slice %41 {offsets = [0, 40], sizes = [2, 20], strides = [1, 1]} : vector<2x80xf32> to vector<2x20xf32>
      %59 = math.tanh %58 : vector<2x20xf32>
      %60 = vector.extract_strided_slice %41 {offsets = [0, 60], sizes = [2, 20], strides = [1, 1]} : vector<2x80xf32> to vector<2x20xf32>
      %cst_46 = arith.constant 0.000000e+00 : f32
      %61 = vector.broadcast %cst_46 : f32 to vector<2x20xf32>
      %62 = arith.subf %61, %60 : vector<2x20xf32>
      %63 = math.exp %62 : vector<2x20xf32>
      %cst_47 = arith.constant 1.000000e+00 : f32
      %64 = vector.broadcast %cst_47 : f32 to vector<2x20xf32>
      %65 = arith.addf %64, %63 : vector<2x20xf32>
      %cst_48 = arith.constant 1.000000e+00 : f32
      %66 = vector.broadcast %cst_48 : f32 to vector<2x20xf32>
      %67 = arith.divf %66, %65 : vector<2x20xf32>
      %68 = arith.mulf %57, %arg14 : vector<2x20xf32>
      %69 = arith.mulf %49, %59 : vector<2x20xf32>
      %70 = arith.addf %68, %69 : vector<2x20xf32>
      %71 = math.tanh %70 : vector<2x20xf32>
      %72 = arith.mulf %67, %71 : vector<2x20xf32>
      %73 = vector.broadcast %9 : vector<1x20xf32> to vector<2x20xf32>
      %74 = arith.mulf %72, %73 : vector<2x20xf32>
      %cst_49 = arith.constant dense<0.000000e+00> : vector<2xf32>
      %75 = vector.multi_reduction <add>, %74, %cst_49 [1] : vector<2x20xf32> to vector<2xf32>
      %76 = vector.shape_cast %75 : vector<2xf32> to vector<2x1xf32>
      %77 = arith.index_cast %31 : i32 to index
      %c0_50 = arith.constant 0 : index
      %c0_51 = arith.constant 0 : index
      %78 = vector.load %arg11[%77, %c0_50, %c0_51] : memref<16x2x1xf32, #tpu.memory_space<vmem>>, vector<1x2x1xf32>
      %79 = vector.shape_cast %78 : vector<1x2x1xf32> to vector<2x1xf32>
      %80 = vector.shape_cast %76 : vector<2x1xf32> to vector<1x2x1xf32>
      tpu.vector_store %arg11[%77, %c0_50, %c0_51], %80 {strides = array<i32>} : memref<16x2x1xf32, #tpu.memory_space<vmem>>, vector<1x2x1xf32>,
      scf.yield %72, %70 : vector<2x20xf32>, vector<2x20xf32>
    }
    %c16_i32_21 = arith.constant 16 : i32
    %cst_22 = arith.constant 0.000000e+00 : f32
    %16 = vector.broadcast %cst_22 : f32 to vector<2x20xf32>
    %cst_23 = arith.constant 0.000000e+00 : f32
    %17 = vector.broadcast %cst_23 : f32 to vector<2x20xf32>
    %cst_24 = arith.constant 0.000000e+00 : f32
    %18 = vector.broadcast %cst_24 : f32 to vector<2x155xf32>
    %c0_i32_25 = arith.constant 0 : i32
    %c16_i32_26 = arith.constant 16 : i32
    %19 = arith.addi %c0_i32_25, %c16_i32_26 : i32
    %c1_i32_27 = arith.constant 1 : i32
    %20:3 = scf.for %arg12 = %c0_i32_25 to %19 step %c1_i32_27 iter_args(%arg13 = %16, %arg14 = %17, %arg15 = %18) -> (vector<2x20xf32>, vector<2x20xf32>, vector<2x155xf32>)  : i32 {
      %31 = arith.index_cast %arg12 : i32 to index
      %c0_37 = arith.constant 0 : index
      %c0_38 = arith.constant 0 : index
      %32 = vector.load %arg1[%31, %c0_37, %c0_38] : memref<16x2x1xf32, #tpu.memory_space<vmem>>, vector<1x2x1xf32>
      %33 = vector.shape_cast %32 : vector<1x2x1xf32> to vector<2x1xf32>
      %34 = vector.broadcast %33 : vector<2x1xf32> to vector<2x80xf32>
      %35 = vector.broadcast %0 : vector<1x80xf32> to vector<2x80xf32>
      %36 = arith.mulf %34, %35 : vector<2x80xf32>
      %cst_39 = arith.constant dense<0.000000e+00> : vector<2x80xf32>
      %37 = tpu.matmul %arg13, %2, %cst_39 {dimension_numbers = #tpu.dot_dimension_numbers<[1], [0], [0], [1], [0, 0, 1, 1], [], []>, precision = #tpu.contract_precision<fp32>} : vector<2x20xf32>, vector<20x80xf32>, vector<2x80xf32> -> vector<2x80xf32>
      %38 = arith.addf %36, %37 : vector<2x80xf32>
      %39 = vector.broadcast %3 : vector<1x80xf32> to vector<2x80xf32>
      %40 = arith.addf %38, %39 : vector<2x80xf32>
      %41 = vector.extract_strided_slice %40 {offsets = [0, 0], sizes = [2, 20], strides = [1, 1]} : vector<2x80xf32> to vector<2x20xf32>
      %cst_40 = arith.constant 0.000000e+00 : f32
      %42 = vector.broadcast %cst_40 : f32 to vector<2x20xf32>
      %43 = arith.subf %42, %41 : vector<2x20xf32>
      %44 = math.exp %43 : vector<2x20xf32>
      %cst_41 = arith.constant 1.000000e+00 : f32
      %45 = vector.broadcast %cst_41 : f32 to vector<2x20xf32>
      %46 = arith.addf %45, %44 : vector<2x20xf32>
      %cst_42 = arith.constant 1.000000e+00 : f32
      %47 = vector.broadcast %cst_42 : f32 to vector<2x20xf32>
      %48 = arith.divf %47, %46 : vector<2x20xf32>
      %49 = vector.extract_strided_slice %40 {offsets = [0, 20], sizes = [2, 20], strides = [1, 1]} : vector<2x80xf32> to vector<2x20xf32>
      %cst_43 = arith.constant 0.000000e+00 : f32
      %50 = vector.broadcast %cst_43 : f32 to vector<2x20xf32>
      %51 = arith.subf %50, %49 : vector<2x20xf32>
      %52 = math.exp %51 : vector<2x20xf32>
      %cst_44 = arith.constant 1.000000e+00 : f32
      %53 = vector.broadcast %cst_44 : f32 to vector<2x20xf32>
      %54 = arith.addf %53, %52 : vector<2x20xf32>
      %cst_45 = arith.constant 1.000000e+00 : f32
      %55 = vector.broadcast %cst_45 : f32 to vector<2x20xf32>
      %56 = arith.divf %55, %54 : vector<2x20xf32>
      %57 = vector.extract_strided_slice %40 {offsets = [0, 40], sizes = [2, 20], strides = [1, 1]} : vector<2x80xf32> to vector<2x20xf32>
      %58 = math.tanh %57 : vector<2x20xf32>
      %59 = vector.extract_strided_slice %40 {offsets = [0, 60], sizes = [2, 20], strides = [1, 1]} : vector<2x80xf32> to vector<2x20xf32>
      %cst_46 = arith.constant 0.000000e+00 : f32
      %60 = vector.broadcast %cst_46 : f32 to vector<2x20xf32>
      %61 = arith.subf %60, %59 : vector<2x20xf32>
      %62 = math.exp %61 : vector<2x20xf32>
      %cst_47 = arith.constant 1.000000e+00 : f32
      %63 = vector.broadcast %cst_47 : f32 to vector<2x20xf32>
      %64 = arith.addf %63, %62 : vector<2x20xf32>
      %cst_48 = arith.constant 1.000000e+00 : f32
      %65 = vector.broadcast %cst_48 : f32 to vector<2x20xf32>
      %66 = arith.divf %65, %64 : vector<2x20xf32>
      %67 = arith.mulf %56, %arg14 : vector<2x20xf32>
      %68 = arith.mulf %48, %58 : vector<2x20xf32>
      %69 = arith.addf %67, %68 : vector<2x20xf32>
      %70 = math.tanh %69 : vector<2x20xf32>
      %71 = arith.mulf %66, %70 : vector<2x20xf32>
      %72 = vector.broadcast %8 : vector<1x20xf32> to vector<2x20xf32>
      %73 = arith.mulf %71, %72 : vector<2x20xf32>
      %cst_49 = arith.constant dense<0.000000e+00> : vector<2xf32>
      %74 = vector.multi_reduction <add>, %73, %cst_49 [1] : vector<2x20xf32> to vector<2xf32>
      %75 = vector.shape_cast %74 : vector<2xf32> to vector<2x1xf32>
      %76 = arith.index_cast %arg12 : i32 to index
      %c0_50 = arith.constant 0 : index
      %c0_51 = arith.constant 0 : index
      %77 = vector.load %arg11[%76, %c0_50, %c0_51] : memref<16x2x1xf32, #tpu.memory_space<vmem>>, vector<1x2x1xf32>
      %78 = vector.shape_cast %77 : vector<1x2x1xf32> to vector<2x1xf32>
      %79 = arith.addf %75, %78 : vector<2x1xf32>
      %80 = vector.broadcast %10 : vector<1x1xf32> to vector<2x1xf32>
      %81 = arith.addf %79, %80 : vector<2x1xf32>
      %cst_52 = arith.constant 0.000000e+00 : f32
      %82 = vector.broadcast %cst_52 : f32 to vector<2x1xf32>
      %83 = arith.maximumf %81, %82 : vector<2x1xf32>
      %84 = arith.index_cast %arg12 : i32 to index
      %c0_53 = arith.constant 0 : index
      %c0_54 = arith.constant 0 : index
      %85 = vector.load %arg6[%84, %c0_53, %c0_54] : memref<16x1x155xf32, #tpu.memory_space<vmem>>, vector<1x1x155xf32>
      %86 = vector.shape_cast %85 : vector<1x1x155xf32> to vector<1x155xf32>
      %87 = vector.broadcast %83 : vector<2x1xf32> to vector<2x155xf32>
      %88 = vector.broadcast %86 : vector<1x155xf32> to vector<2x155xf32>
      %89 = arith.mulf %87, %88 : vector<2x155xf32>
      %90 = arith.addf %arg15, %89 : vector<2x155xf32>
      scf.yield %71, %69, %90 : vector<2x20xf32>, vector<2x20xf32>, vector<2x155xf32>
    }
    %c16_i32_28 = arith.constant 16 : i32
    %c0_29 = arith.constant 0 : index
    %c0_30 = arith.constant 0 : index
    %21 = vector.load %arg7[%c0_29, %c0_30] : memref<1x155xf32, #tpu.memory_space<vmem>>, vector<1x155xf32>
    %22 = vector.broadcast %21 : vector<1x155xf32> to vector<2x155xf32>
    %23 = arith.addf %20#2, %22 : vector<2x155xf32>
    %cst_31 = arith.constant 0.000000e+00 : f32
    %24 = vector.broadcast %cst_31 : f32 to vector<2x155xf32>
    %25 = arith.maximumf %23, %24 : vector<2x155xf32>
    %c0_32 = arith.constant 0 : index
    %c0_33 = arith.constant 0 : index
    %26 = vector.load %arg8[%c0_32, %c0_33] : memref<155x64xf32, #tpu.memory_space<vmem>>, vector<155x64xf32>
    %cst_34 = arith.constant dense<0.000000e+00> : vector<2x64xf32>
    %27 = tpu.matmul %25, %26, %cst_34 {dimension_numbers = #tpu.dot_dimension_numbers<[1], [0], [0], [1], [0, 0, 1, 1], [], []>, precision = #tpu.contract_precision<fp32>} : vector<2x155xf32>, vector<155x64xf32>, vector<2x64xf32> -> vector<2x64xf32>
    %28 = vector.broadcast %11 : vector<1x1xf32> to vector<2x64xf32>
    %29 = arith.addf %27, %28 : vector<2x64xf32>
    %c0_35 = arith.constant 0 : index
    %c0_36 = arith.constant 0 : index
    %30 = vector.load %arg10[%c0_35, %c0_36] : memref<2x64xf32, #tpu.memory_space<vmem>>, vector<2x64xf32>
    tpu.vector_store %arg10[%c0_35, %c0_36], %29 {strides = array<i32>} : memref<2x64xf32, #tpu.memory_space<vmem>>, vector<2x64xf32>,
    return
  }
  func.func @transform_0(%arg0: i32) -> (i32, i32, i32) {
    %c0_i32 = arith.constant 0 : i32
    %c0_i32_0 = arith.constant 0 : i32
    %c0_i32_1 = arith.constant 0 : i32
    %c0_i32_2 = arith.constant 0 : i32
    return %c0_i32, %c0_i32_0, %c0_i32_1 : i32, i32, i32
  }
  func.func @transform_1(%arg0: i32) -> (i32, i32) {
    %c0_i32 = arith.constant 0 : i32
    %c0_i32_0 = arith.constant 0 : i32
    %c0_i32_1 = arith.constant 0 : i32
    return %c0_i32, %c0_i32_0 : i32, i32
  }
  func.func @transform_2(%arg0: i32) -> (i32, i32, i32) {
    %c0_i32 = arith.constant 0 : i32
    %c0_i32_0 = arith.constant 0 : i32
    %c0_i32_1 = arith.constant 0 : i32
    %c0_i32_2 = arith.constant 0 : i32
    return %c0_i32, %c0_i32_0, %c0_i32_1 : i32, i32, i32
  }
  func.func @transform_3(%arg0: i32) -> (i32, i32) {
    %c0_i32 = arith.constant 0 : i32
    %c0_i32_0 = arith.constant 0 : i32
    %c0_i32_1 = arith.constant 0 : i32
    return %c0_i32, %c0_i32_0 : i32, i32
  }
  func.func @transform_4(%arg0: i32) -> (i32, i32) {
    %c0_i32 = arith.constant 0 : i32
    %c0_i32_0 = arith.constant 0 : i32
    %c0_i32_1 = arith.constant 0 : i32
    return %c0_i32, %c0_i32_0 : i32, i32
  }
  func.func @transform_5(%arg0: i32) -> (i32, i32, i32) {
    %c0_i32 = arith.constant 0 : i32
    %c0_i32_0 = arith.constant 0 : i32
    %c0_i32_1 = arith.constant 0 : i32
    %c0_i32_2 = arith.constant 0 : i32
    return %c0_i32, %c0_i32_0, %c0_i32_1 : i32, i32, i32
  }
  func.func @transform_6(%arg0: i32) -> (i32, i32) {
    %c0_i32 = arith.constant 0 : i32
    %c0_i32_0 = arith.constant 0 : i32
    %c0_i32_1 = arith.constant 0 : i32
    return %c0_i32, %c0_i32_0 : i32, i32
  }
  func.func @transform_7(%arg0: i32) -> (i32, i32) {
    %c0_i32 = arith.constant 0 : i32
    %c0_i32_0 = arith.constant 0 : i32
    %c0_i32_1 = arith.constant 0 : i32
    return %c0_i32, %c0_i32_0 : i32, i32
  }
  func.func @transform_8(%arg0: i32) -> (i32, i32) {
    %c0_i32 = arith.constant 0 : i32
    %c0_i32_0 = arith.constant 0 : i32
    %c0_i32_1 = arith.constant 0 : i32
    return %c0_i32, %c0_i32_0 : i32, i32
  }
  func.func @transform_9(%arg0: i32) -> (i32, i32) {
    %c0_i32 = arith.constant 0 : i32
    %c0_i32_0 = arith.constant 0 : i32
    %c0_i32_1 = arith.constant 0 : i32
    return %c0_i32, %c0_i32_0 : i32, i32
  }
}

</mosaic_0001>

<bundles_post_ra>
// kernel: lstm_forward.1
= control target key start
LH: loop header
LB: loop body
LE: loop exit
PB: predicated region body
PF: predicated region fallthrough
CT: control target
= control target key end

     0   :  { %14 = vsyncpa [#allocation4], 0  ;;  %v2722_v13 = vmov 0.0   ;;  %v2724_v14 = vmov 0.0   ;;  %s3324_s0 = inlined_call_operand.vmem [shape: f32[16,2,1], index: 0, kind: input, shape index: {}]   ;;  %s3325_s1 = inlined_call_operand.vmem [shape: f32[2,80], index: 1, kind: input, shape index: {}]   ;;  %s3326_s2 = inlined_call_operand.vmem [shape: f32[2,20,80], index: 2, kind: input, shape index: {}]   ;;  %s3327_s3 = inlined_call_operand.vmem [shape: f32[2,80], index: 3, kind: input, shape index: {}]   ;;  %s3328_s4 = inlined_call_operand.vmem [shape: f32[2,20], index: 4, kind: input, shape index: {}]   ;;  %s3329_s5 = inlined_call_operand.vmem [shape: f32[16,1,155], index: 5, kind: input, shape index: {}]   ;;  %s3330_s6 = inlined_call_operand.vmem [shape: f32[1,155], index: 6, kind: input, shape index: {}]   ;;  %s3331_s7 = inlined_call_operand.vmem [shape: f32[155,64], index: 7, kind: input, shape index: {}]   ;;  %s3332_s8 = inlined_call_operand.vmem [shape: f32[1,2], index: 8, kind: input, shape index: {}]   ;;  %s3333_s9 = inlined_call_operand.hbm [shape: f32[2,64], index: 9, kind: output, shape index: {}]  }
   0x1   :  { %v2660_v0 = vld [vmem:[%s3325_s1] ss:$0 sm:$0xff]  ;;  %v2670_v2 = vld [vmem:[%s3326_s2 + $0x8] sm:$0xff]  ;;  %v2675_v3 = vld [vmem:[%s3326_s2 + $0x10] sm:$0xf] }
   0x2   :  { %v2665_v1 = vld [vmem:[%s3326_s2] sm:$0xff]  ;;  %v2690_v6 = vld [vmem:[%s3326_s2 + $0x18] sm:$0xff]  ;;  %v2700_v8 = vld [vmem:[%s3326_s2 + $0x28] sm:$0xf] }
   0x3   :  { %v2680_v4 = vld [vmem:[%s3327_s3] ss:$0 sm:$0xff]  ;;  %v2685_v5 = vld [vmem:[%s3325_s1 + $0x1] ss:$0 sm:$0xff] }
   0x4   :  { %v2695_v7 = vld [vmem:[%s3326_s2 + $0x20] sm:$0xff]  ;;  %s2726_s2 = smov 0  }
   0x5   :  { %v2705_v9 = vld [vmem:[%s3327_s3 + $0x1] ss:$0 sm:$0xff]  ;;  %v2710_v10 = vld [vmem:[%s3328_s4] ss:$0 sm:$0xff] }
   0x6   :  { %v2715_v11 = vld [vmem:[%s3328_s4 + $0x1] ss:$0 sm:$0xff]  ;;  %v2720_v12 = vld [vmem:[%s3332_s8] ss:$0 sm:$0xff] }
   0x7 LB: > { %v80_v15 = vand.u32 4294901760, %v2690_v6  ;;  %v83_v16 = vand.u32 4294901760, %v2695_v7  ;;  %v2586_v17 = vmov 0.0|0.0   ;;  %vm75_vm0 = vcmask 1043456   ;;  %s2587_s3 = smov 68   ;;  %s55_s4 = ssub.s32 15, %s2564_s2  ;;  %s2564_s2 = sphi %s2726_s2, %s52_s2   ;;  %v2560_v14 = vphi %v2724_v14, %v580_v14   ;;  %v2556_v13 = vphi %v2722_v13, %v574_v13  }
   0x8   : > { %2170 = vmatprep.subr.bf16.mxu1 %v2586_v17  ;;  %2167 = vmatprep.subr.bf16.mxu0 %v2586_v17  ;;  %v77_v20 = vsel %vm75_vm0, %v2700_v8, 0  ;;  %vm2588_vm1 = vmmov 0   ;;  %v2589_v22 = vmov 0.0   ;;  %v2590_v37 = vmov 0   ;;  %s2748_s8 = sshll.u32 %s55_s4, 1  ;;  %s2591_s16 = smov 88  }
   0x9   : > { %70 = vrot.lane.b32.xlu0 %v2560_v14, %s2587_s3  ;;  %v159_v18 = vsub.f32 %v2690_v6, %v80_v15  ;;  %v166_v19 = vsub.f32 %v2695_v7, %v83_v16  ;;  %v86_v21 = vand.u32 4294901760, %v77_v20  ;;  %2074 = vmatprep.mubr.msk.f32.mxu1 %vm2588_vm1, %v2589_v22  ;;  %v2168_v23 = vpack.c.bf16 %v83_v16, %v80_v15  ;;  %s57_s15 = scalar_lea.vmem %s3324_s0, %s2748_s8  ;;  %s2592_s17 = smov 20  }
   0xa   : > { %2065 = vmatprep.mubr.msk.f32.mxu0 %vm2588_vm1, %v2589_v22  ;;  %2478 = vset.pattern.permute.xlu0 %v2590_v37  ;;  %v58_v38 = vld [vmem:[%s57_s15] sm:$0x3]  ;;  %vm72_vm2 = vcmask 162816   ;;  %s2593_s18 = smov 60   ;;  %s2594_s19 = smov 40   ;;  %vm594_vm3 = vcmask 156672  }
   0xb   : > { %v160_v24 = vand.u32 4294901760, %v159_v18  ;;  %v167_v25 = vand.u32 4294901760, %v166_v19  ;;  %v2174_v26 = vpack.c.bf16 %v166_v19, %v159_v18  ;;  %v173_v27 = vsub.f32 %v77_v20, %v86_v21  ;;  %2169 = vmatpush3.bf16.msra.mxu0 %v2168_v23  ;;  %s598_s20 = scalar_lea.vmem [#allocation2], %s2748_s8  ;;  %s52_s2 = sadd.s32 1, %s2564_s2  }
   0xc   : > { %2063 = vmatprep.subr.mxu0 %v2589_v22  ;;  %vm599_vm4 = vcmask 1024   ;;  %p49_p0 = scmp.ge.s32.totalorder %s52_s2, 16  }
   0xd   : > { %v161_v28 = vsub.f32 %v159_v18, %v160_v24  ;;  %v168_v29 = vsub.f32 %v166_v19, %v167_v25  ;;  %v2180_v30 = vpack.c.bf16 %v167_v25, %v160_v24  ;;  %v174_v31 = vand.u32 4294901760, %v173_v27  ;;  %61 = vperm.xlu0 %2478, %v58_v38   ;;  %s2784_s21 = smov (%p49_p0), 0  }
   0xe   :  { %v2782_v37 = vmov (%p49_p0), 0.0  }
   0xf   : > { %v162_v32 = vand.u32 4294901760, %v161_v28  ;;  %v169_v33 = vand.u32 4294901760, %v168_v29  ;;  %v175_v34 = vsub.f32 %v173_v27, %v174_v31  ;;  %2064 = vmatpush3.msra.mxu0 %v86_v21 }
  0x10   : > { %2173 = vmatprep.subr.bf16.mxu0 %v2586_v17 }
  0x11   : > { %v2171_v35 = vpack.c.bf16 %v169_v33, %v162_v32  ;;  %v176_v36 = vand.u32 4294901760, %v175_v34  ;;  %586 = vrot.lane.b32.xlu0 %v2715_v11, %s2593_s18  ;;  %v2776_v34 = vmov (%p49_p0), 0.0  }
  0x13   : > { %2172 = vmatpush3.bf16.msra.mxu1 %v2171_v35  ;;  %v2778_v35 = vmov (%p49_p0), 0.0  }
  0x14   : > { %2072 = vmatprep.subr.mxu1 %v2589_v22 }
  0x17   : > { %2073 = vmatpush3.msra.mxu1 %v176_v36  ;;  %v2780_v36 = vmov (%p49_p0), 0.0  }
  0x18   : > { %2176 = vmatprep.subr.bf16.mxu1 %v2586_v17 }
  0x7b   : > { %v71_v39 = vpop.permute.xlu0 %70 }
  0x7c   : > { %v73_v40 = vsel %vm72_vm2, %v71_v39, 0 }
  0x7d   : > { %v147_v41 = vand.u32 4294901760, %v73_v40 }
  0x7f   : > { %v148_v42 = vsub.f32 %v73_v40, %v147_v41  ;;  %2075 = vmatmul.mubr.f32.vlgmr.msra.gmra.mrb[0].mxu1 %v147_v41 }
  0x80   : > { %2178 = vmatpush3.bf16.msra.mxu1 %v2168_v23  ;;  %2092 = vmatprep.mubr.msk.f32.mxu1 %vm2588_vm1, %v2589_v22 }
  0x81   : > { %v149_v43 = vand.u32 4294901760, %v148_v42  ;;  %2090 = vmatprep.subr.mxu1 %v2589_v22 }
  0x83   : > { %v150_v44 = vsub.f32 %v148_v42, %v149_v43 }
  0x84   : > { %2091 = vmatpush3.msra.mxu1 %v86_v21 }
  0x85   : > { %2093 = vmatmul.mubr.f32.vlgmr.msra.gmra.mrb[2].mxu1 %v149_v43  ;;  %2182 = vmatprep.subr.bf16.mxu1 %v2586_v17  ;;  %v151_v45 = vand.u32 4294901760, %v150_v44 }
  0x86   : > { %2184 = vmatpush3.bf16.msra.mxu1 %v2168_v23  ;;  %2110 = vmatprep.mubr.msk.f32.mxu1 %vm2588_vm1, %v2589_v22 }
  0x87   : > { %2066 = vmatmul.mubr.f32.vlgmr.msra.gmra.mrb[0].mxu0 %v151_v45  ;;  %2108 = vmatprep.subr.mxu1 %v2589_v22 }
  0x88   : > { %2175 = vmatpush3.bf16.msra.mxu0 %v2174_v26  ;;  %2083 = vmatprep.mubr.msk.f32.mxu0 %vm2588_vm1, %v2589_v22 }
  0x89   : > { %2081 = vmatprep.subr.mxu0 %v2589_v22 }
  0x8a   : > { %2109 = vmatpush3.msra.mxu1 %v86_v21 }
  0x8b   : > { %2111 = vmatmul.mubr.f32.vlgmr.msra.gmra.mrb[4].mxu1 %v147_v41 }
  0x8c   : > { %2082 = vmatpush3.msra.mxu0 %v173_v27  ;;  %v62_v59 = vpop.permute.xlu0 %61 }
  0x8d   : > { %2084 = vmatmul.mubr.f32.vlgmr.msra.gmra.mrb[2].mxu0 %v148_v42  ;;  %2179 = vmatprep.subr.bf16.mxu0 %v2586_v17  ;;  %v68_v63 = vmul.f32 %v2685_v5, %v62_v59 }
  0x8e   : > { %2181 = vmatpush3.bf16.msra.mxu0 %v2180_v30  ;;  %2101 = vmatprep.mubr.msk.f32.mxu0 %vm2588_vm1, %v2589_v22 }
  0x8f   : > { %2099 = vmatprep.subr.mxu0 %v2589_v22 }
  0x90   : > { %v587_v29 = vpop.permute.xlu0 %586 }
  0x92   : > { %2100 = vmatpush3.msra.mxu0 %v174_v31 }
  0x93   : > { %2102 = vmatmul.mubr.f32.vlgmr.msra.gmra.mrb[4].mxu0 %v147_v41 }
 0x152   : > { %v239_v46 = vpop.f32.mrb[0].mxu1 }
 0x153   : > { %v2076_v47 = vpop.f32.mrb[1].mxu1 }
 0x158   : > { %v393_v48 = vpop.f32.mrb[2].mxu1 }
 0x159   : > { %v2094_v49 = vpop.f32.mrb[3].mxu1 }
 0x15a   : > { %v153_v50 = vpop.f32.mrb[0].mxu0 }
 0x15b   : > { %v240_v51 = vadd.f32 %v239_v46, %v153_v50  ;;  %v2067_v52 = vpop.f32.mrb[1].mxu0 }
 0x15e   : > { %v547_v53 = vpop.f32.mrb[4].mxu1 }
 0x15f   : > { %v2112_v54 = vpop.f32.mrb[5].mxu1 }
 0x160   : > { %v317_v55 = vpop.f32.mrb[2].mxu0 }
 0x161   : > { %v318_v56 = vadd.f32 %v317_v55, %v240_v51  ;;  %v2085_v57 = vpop.f32.mrb[3].mxu0 }
 0x163   : > { %v394_v58 = vadd.f32 %v393_v48, %v318_v56 }
 0x166   : > { %v473_v60 = vpop.f32.mrb[4].mxu0 }
 0x167   : > { %v474_v61 = vadd.f32 %v473_v60, %v394_v58  ;;  %v2103_v62 = vpop.f32.mrb[5].mxu0 }
 0x169   : > { %v548_v14 = vadd.f32 %v547_v53, %v474_v61 }
 0x16b   : > { %v551_v15 = vadd.f32 %v548_v14, %v68_v63 }
 0x16d   : > { %v556_v16 = vadd.f32 %v2705_v9, %v551_v15 }
 0x16f   : > { %2479 = vtanh.f32 %v556_v16  ;;  %v557_v18 = vsub.f32 0.0, %v556_v16 }
 0x171   : > { %v558_v19 = vmul.f32 1.442695, %v557_v18 }
 0x173   : > { %2481 = vpow2.f32 %v558_v19 }
 0x179   : > { %v2480_v17 = vpop.eup %2479 }
 0x17a   : > { %566 = vrot.lane.b32.xlu1 %v2480_v17, %s2591_s16 }
 0x17d   : > { %v2482_v20 = vpop.eup %2481 }
 0x17e   : > { %v560_v21 = vadd.f32 1.0, %v2482_v20 }
 0x180   : > { %2483 = vrcp.f32 %v560_v21 }
 0x18a   : > { %v2484_v22 = vpop.eup %2483 }
 0x18b   : > { %v564_v25 = vmul.f32 %v2556_v13, %v2484_v22 }
 0x1ec   : > { %v567_v23 = vpop.permute.xlu1 %566 }
 0x1ed   : > { %v569_v24 = vmul.f32 %v2484_v22, %v567_v23 }
 0x1ef   : > { %571 = vrot.lane.b32.xlu1 %v569_v24, %s2592_s17 }
 0x261   : > { %v572_v26 = vpop.permute.xlu1 %571 }
 0x262   : > { %v574_v13 = vadd.f32 %v572_v26, %v564_v25  }
 0x264   : > { %2485 = vtanh.f32 %v574_v13 }
 0x26e   : > { %v2486_v27 = vpop.eup %2485 }
 0x26f   : > { %577 = vrot.lane.b32.xlu1 %v2486_v27, %s2594_s19 }
 0x2e1   : > { %v578_v28 = vpop.permute.xlu1 %577 }
 0x2e2   : > { %v580_v14 = vmul.f32 %v2484_v22, %v578_v28  }
 0x2e4   : > { %v589_v30 = vmul.f32 %v587_v29, %v580_v14 }
 0x2e6   : > { %591 = vrot.lane.b32.xlu1 %v589_v30, %s2587_s3 }
 0x358   : > { %v592_v31 = vpop.permute.xlu1 %591 }
 0x359   : > { %v595_v32 = vsel %vm594_vm3, %v592_v31, 0.0 }
 0x35a   : > { %596 = vadd.xlane.f32.xlu0 %v595_v32 }
 0x3e2   :  { %51 = sbr.rel (!%p49_p0) target bundleno = 7 (0x7), region = 76 }
 0x3e7   : > { %v597_v33 = vpop.xlane.xlu0 %596 }
 0x3e8   : > { %600 = vst.msk [vmem:[%s598_s20] sm:$0x3] %vm599_vm4, %v597_v33 }
 0x3e9 LB: > { %v635_v5 = vand.u32 4294901760, %v2665_v1  ;;  %v638_v6 = vand.u32 4294901760, %v2670_v2  ;;  %v2595_v7 = vmov 0.0|0.0   ;;  %v632_v8 = vsel %vm75_vm0, %v2675_v3, 0  ;;  %s2596_s22 = smov 68   ;;  %s2812_s23 = sshll.u32 %s2584_s21, 1  ;;  %s2584_s21 = sphi %s2784_s21, %s606_s21   ;;  %v2580_v37 = vphi %v2782_v37, %v1135_v37   ;;  %v2576_v36 = vphi %v2780_v36, %v1129_v36   ;;  %v2572_v35 = vphi %v2778_v35, %v3339_v35   ;;  %v2568_v34 = vphi %v2776_v34, %v3338_v34  }
 0x3ea   : > { %2188 = vmatprep.subr.bf16.mxu1 %v2595_v7  ;;  %2185 = vmatprep.subr.bf16.mxu0 %v2595_v7  ;;  %v641_v13 = vand.u32 4294901760, %v632_v8  ;;  %vm2597_vm5 = vmmov 0   ;;  %v2598_v38 = vmov 0.0   ;;  %v2599_v53 = vmov 0   ;;  %s612_s26 = scalar_lea.vmem %s3324_s0, %s2812_s23  ;;  %s2600_s27 = smov 88  }
 0x3eb   : > { %625 = vrot.lane.b32.xlu0 %v2580_v37, %s2596_s22  ;;  %v714_v9 = vsub.f32 %v2665_v1, %v635_v5  ;;  %v721_v11 = vsub.f32 %v2670_v2, %v638_v6  ;;  %2128 = vmatprep.mubr.msk.f32.mxu1 %vm2597_vm5, %v2598_v38  ;;  %v2186_v39 = vpack.c.bf16 %v638_v6, %v635_v5  ;;  %v613_v54 = vld [vmem:[%s612_s26] sm:$0x3]  ;;  %s2601_s28 = smov 20   ;;  %s2602_s1 = smov 60  }
 0x3ec   : > { %2119 = vmatprep.mubr.msk.f32.mxu0 %vm2597_vm5, %v2598_v38  ;;  %v728_v42 = vsub.f32 %v632_v8, %v641_v13  ;;  %2487 = vset.pattern.permute.xlu0 %v2599_v53  ;;  %s2603_s29 = smov 40   ;;  %s1153_s30 = scalar_lea.vmem [#allocation2], %s2812_s23 }
 0x3ed   : > { %v715_v40 = vand.u32 4294901760, %v714_v9  ;;  %v722_v41 = vand.u32 4294901760, %v721_v11  ;;  %2187 = vmatpush3.bf16.msra.mxu0 %v2186_v39  ;;  %v2192_v43 = vpack.c.bf16 %v721_v11, %v714_v9  ;;  %2488 = vset.pattern.permute.xlu1 %v2599_v53  ;;  %s1164_s12 = scalar_lea.vmem %s3329_s5, %s2812_s23  ;;  %s606_s21 = sadd.s32 1, %s2584_s21  }
 0x3ee   : > { %2117 = vmatprep.subr.mxu0 %v2598_v38  ;;  %v729_v46 = vand.u32 4294901760, %v728_v42  ;;  %p603_p1 = scmp.ge.s32.totalorder %s606_s21, 16  }
 0x3ef   : > { %v716_v44 = vsub.f32 %v714_v9, %v715_v40  ;;  %v723_v45 = vsub.f32 %v721_v11, %v722_v41  ;;  %v2198_v47 = vpack.c.bf16 %v722_v41, %v715_v40  ;;  %616 = vperm.xlu0 %2487, %v613_v54   ;;  %v1165_v54 = vld [vmem:[%s1164_s12] sm:$0x3]  ;;  %v2877_v2 = vld [vmem:[%s3331_s7 + $0x18] sm:$0xff] (%p603_p1)  ;;  %vm1231_vm6 = vcmask (%p603_p1), 220160  }
 0x3f0   : > { %v730_v50 = vsub.f32 %v728_v42, %v729_v46  ;;  %vm1235_vm7 = vcmask (%p603_p1), 1042432   ;;  %vm1945_vm8 = vcmask (%p603_p1), 517120  }
 0x3f1   : > { %v717_v48 = vand.u32 4294901760, %v716_v44  ;;  %v724_v49 = vand.u32 4294901760, %v723_v45  ;;  %2118 = vmatpush3.msra.mxu0 %v641_v13  ;;  %v1154_v45 = vld [vmem:[%s1153_s30] sm:$0x3] }
 0x3f2   : > { %2191 = vmatprep.subr.bf16.mxu0 %v2595_v7  ;;  %v731_v52 = vand.u32 4294901760, %v730_v50  ;;  %v1157_v50 = vlaneseq }
 0x3f3   : > { %v2189_v51 = vpack.c.bf16 %v724_v49, %v717_v48  ;;  %1141 = vrot.lane.b32.xlu0 %v2710_v10, %s2602_s1  ;;  %v2884_v10 = vld [vmem:[%s3331_s7 + $0x20] sm:$0xff] (%p603_p1) }
 0x3f5   : > { %2190 = vmatpush3.bf16.msra.mxu1 %v2189_v51  ;;  %v2834_v51 = vshrl.u32 %v1157_v50, 7 }
 0x3f6   : > { %2126 = vmatprep.subr.mxu1 %v2598_v38 }
 0x3f7   : > { %v1178_v53 = vsub.s32 1, %v2834_v51 }
 0x3f9   : > { %2127 = vmatpush3.msra.mxu1 %v731_v52  ;;  %v1159_v52 = vsub.s32 0, %v2834_v51 }
 0x3fa   : > { %2194 = vmatprep.subr.bf16.mxu1 %v2595_v7 }
 0x45d   : > { %v626_v55 = vpop.permute.xlu0 %625 }
 0x45e   : > { %v628_v56 = vsel %vm72_vm2, %v626_v55, 0  ;;  %v1175_v55 = vrot.slane %v1165_v54, %v1159_v52 }
 0x45f   : > { %v702_v57 = vand.u32 4294901760, %v628_v56 }
 0x461   : > { %v703_v58 = vsub.f32 %v628_v56, %v702_v57  ;;  %2129 = vmatmul.mubr.f32.vlgmr.msra.gmra.mrb[0].mxu1 %v702_v57  ;;  %v1179_v56 = vrot.slane %v1165_v54, %v1178_v53  ;;  %v3048_v54 = vld [vmem:[%s3331_s7 + $0x88] sm:$0xff] (%p603_p1) }
 0x462   : > { %2196 = vmatpush3.bf16.msra.mxu1 %v2186_v39  ;;  %2146 = vmatprep.mubr.msk.f32.mxu1 %vm2597_vm5, %v2598_v38 }
 0x463   : > { %v704_v59 = vand.u32 4294901760, %v703_v58  ;;  %2144 = vmatprep.subr.mxu1 %v2598_v38 }
 0x465   : > { %v705_v60 = vsub.f32 %v703_v58, %v704_v59 }
 0x466   : > { %2145 = vmatpush3.msra.mxu1 %v641_v13 }
 0x467   : > { %2147 = vmatmul.mubr.f32.vlgmr.msra.gmra.mrb[2].mxu1 %v704_v59  ;;  %2200 = vmatprep.subr.bf16.mxu1 %v2595_v7  ;;  %v706_v61 = vand.u32 4294901760, %v705_v60 }
 0x468   : > { %2202 = vmatpush3.bf16.msra.mxu1 %v2186_v39  ;;  %2164 = vmatprep.mubr.msk.f32.mxu1 %vm2597_vm5, %v2598_v38 }
 0x469   : > { %2120 = vmatmul.mubr.f32.vlgmr.msra.gmra.mrb[0].mxu0 %v706_v61  ;;  %2162 = vmatprep.subr.mxu1 %v2598_v38 }
 0x46a   : > { %2193 = vmatpush3.bf16.msra.mxu0 %v2192_v43  ;;  %2137 = vmatprep.mubr.msk.f32.mxu0 %vm2597_vm5, %v2598_v38 }
 0x46b   : > { %2135 = vmatprep.subr.mxu0 %v2598_v38 }
 0x46c   : > { %2163 = vmatpush3.msra.mxu1 %v641_v13 }
 0x46d   : > { %2165 = vmatmul.mubr.f32.vlgmr.msra.gmra.mrb[4].mxu1 %v702_v57 }
 0x46e   : > { %2136 = vmatpush3.msra.mxu0 %v728_v42  ;;  %v617_v25 = vpop.permute.xlu0 %616 }
 0x46f   : > { %2138 = vmatmul.mubr.f32.vlgmr.msra.gmra.mrb[2].mxu0 %v703_v58  ;;  %2197 = vmatprep.subr.bf16.mxu0 %v2595_v7  ;;  %v623_v29 = vmul.f32 %v2660_v0, %v617_v25  ;;  %v1186_v25 = vld [vmem:[%s3330_s6] sm:$0x3] (%p603_p1) }
 0x470   : > { %2199 = vmatpush3.bf16.msra.mxu0 %v2198_v47  ;;  %2155 = vmatprep.mubr.msk.f32.mxu0 %vm2597_vm5, %v2598_v38 }
 0x471   : > { %2153 = vmatprep.subr.mxu0 %v2598_v38 }
 0x472   : > { %v1142_v41 = vpop.permute.xlu0 %1141 }
 0x474   : > { %2154 = vmatpush3.msra.mxu0 %v729_v46 }
 0x475   : > { %2156 = vmatmul.mubr.f32.vlgmr.msra.gmra.mrb[4].mxu0 %v702_v57 }
 0x534   : > { %v794_v62 = vpop.f32.mrb[0].mxu1 }
 0x535   : > { %v2130_v63 = vpop.f32.mrb[1].mxu1 }
 0x536   :  { %v2863_v63 = vld [vmem:[%s3331_s7 + $0x8] sm:$0xff] (%p603_p1) }
 0x537   :  { %v1243_v1 = vand.u32 (%p603_p1), 4294901760, %v2863_v63 }
 0x53a   : > { %v948_v14 = vpop.f32.mrb[2].mxu1 }
 0x53b   : > { %v2148_v15 = vpop.f32.mrb[3].mxu1 }
 0x53c   : > { %v708_v16 = vpop.f32.mrb[0].mxu0  ;;  %v2604_v15 = vmov (%p603_p1), 0.0|0.0  }
 0x53d   : > { %v795_v17 = vadd.f32 %v794_v62, %v708_v16  ;;  %v2121_v18 = vpop.f32.mrb[1].mxu0  ;;  %v2858_v62 = vld [vmem:[%s3331_s7] sm:$0xff] (%p603_p1)  ;;  %2203 = vmatprep.subr.bf16.mxu1 (%p603_p1), %v2604_v15  ;;  %2293 = vmatprep.subr.bf16.mxu0 (%p603_p1), %v2604_v15  ;;  %v1252_v16 = vand.u32 (%p603_p1), 4294901760, %v2884_v10 }
 0x53e   :  { %v1240_v0 = vand.u32 (%p603_p1), 4294901760, %v2858_v62  ;;  %v2912_v18 = vld [vmem:[%s3331_s7 + $0x30] sm:$0xff] (%p603_p1) }
 0x540   : > { %v1102_v19 = vpop.f32.mrb[4].mxu1 }
 0x541   : > { %v2166_v20 = vpop.f32.mrb[5].mxu1 }
 0x542   : > { %v872_v21 = vpop.f32.mrb[2].mxu0 }
 0x543   : > { %v873_v22 = vadd.f32 %v872_v21, %v795_v17  ;;  %v2139_v23 = vpop.f32.mrb[3].mxu0  ;;  %v1258_v21 = vand.u32 (%p603_p1), 4294901760, %v2912_v18 }
 0x544   :  { %v2934_v23 = vld [vmem:[%s3331_s7 + $0x40] sm:$0xff] (%p603_p1) }
 0x545   : > { %v949_v24 = vadd.f32 %v948_v14, %v873_v22  ;;  %v2868_v14 = vld [vmem:[%s3331_s7 + $0x10] sm:$0xff] (%p603_p1) }
 0x546   :  { %v1246_v3 = vand.u32 (%p603_p1), 4294901760, %v2868_v14 }
 0x548   : > { %v1028_v26 = vpop.f32.mrb[4].mxu0 }
 0x549   : > { %v1029_v27 = vadd.f32 %v1028_v26, %v949_v24  ;;  %v2157_v28 = vpop.f32.mrb[5].mxu0  ;;  %v2939_v24 = vld [vmem:[%s3331_s7 + $0x48] sm:$0xff] (%p603_p1) }
 0x54a   :  { %v1267_v28 = vand.u32 (%p603_p1), 4294901760, %v2939_v24 }
 0x54b   : > { %v1103_v30 = vadd.f32 %v1102_v19, %v1029_v27  ;;  %v2917_v19 = vld [vmem:[%s3331_s7 + $0x38] sm:$0xff] (%p603_p1)  ;;  %v1264_v27 = vand.u32 (%p603_p1), 4294901760, %v2934_v23 }
 0x54c   :  { %v1261_v22 = vand.u32 (%p603_p1), 4294901760, %v2917_v19 }
 0x54d   : > { %v1106_v31 = vadd.f32 %v1103_v30, %v623_v29  ;;  %v1191_v29 = vrot.slane (%p603_p1), %v1186_v25, %v1159_v52  ;;  %v2959_v30 = vld [vmem:[%s3331_s7 + $0x50] sm:$0xff] (%p603_p1) }
 0x54e   :  { %v2950_v26 = vpack.c.bf16 (%p603_p1), %v1261_v22, %v1258_v21 }
 0x54f   : > { %v1111_v32 = vadd.f32 %v2680_v4, %v1106_v31  ;;  %v1249_v4 = vand.u32 (%p603_p1), 4294901760, %v2877_v2  ;;  %v2964_v31 = vld [vmem:[%s3331_s7 + $0x58] sm:$0xff] (%p603_p1) }
 0x551   : > { %2489 = vtanh.f32 %v1111_v32  ;;  %v1112_v37 = vsub.f32 0.0, %v1111_v32  ;;  %v1195_v32 = vrot.slane (%p603_p1), %v1186_v25, %v1178_v53  ;;  %v3043_v53 = vld [vmem:[%s3331_s7 + $0x80] sm:$0xff] (%p603_p1) }
 0x553   : > { %v1113_v5 = vmul.f32 1.442695, %v1112_v37 }
 0x555   : > { %2491 = vpow2.f32 %v1113_v5  ;;  %v2972_v5 = vpack.c.bf16 (%p603_p1), %v1267_v28, %v1264_v27 }
 0x55b   : > { %v2490_v33 = vpop.eup %2489 }
 0x55c   : > { %1121 = vrot.lane.b32.xlu1 %v2490_v33, %s2600_s27 }
 0x55f   : > { %v2492_v6 = vpop.eup %2491 }
 0x560   : > { %v1115_v7 = vadd.f32 1.0, %v2492_v6  ;;  %v1270_v6 = vand.u32 (%p603_p1), 4294901760, %v2959_v30 }
 0x562   : > { %2493 = vrcp.f32 %v1115_v7  ;;  %v1273_v7 = vand.u32 (%p603_p1), 4294901760, %v2964_v31 }
 0x56c   : > { %v2494_v8 = vpop.eup %2493 }
 0x56d   : > { %v1119_v13 = vmul.f32 %v2576_v36, %v2494_v8 }
 0x5ce   : > { %v1122_v9 = vpop.permute.xlu1 %1121 }
 0x5cf   : > { %v1124_v11 = vmul.f32 %v2494_v8, %v1122_v9  ;;  %v2986_v9 = vld [vmem:[%s3331_s7 + $0x68] sm:$0xff] (%p603_p1) }
 0x5d1   : > { %1126 = vrot.lane.b32.xlu1 %v1124_v11, %s2601_s28 }
 0x643   : > { %v1127_v38 = vpop.permute.xlu1 %1126 }
 0x644   : > { %v1129_v36 = vadd.f32 %v1127_v38, %v1119_v13  }
 0x646   : > { %2495 = vtanh.f32 %v1129_v36  ;;  %v2903_v36 = vpack.c.bf16 (%p603_p1), %v1249_v4, %v1246_v3 }
 0x650   : > { %v2496_v39 = vpop.eup %2495 }
 0x651   : > { %1132 = vrot.lane.b32.xlu1 %v2496_v39, %s2603_s29  ;;  %v2994_v39 = vpack.c.bf16 (%p603_p1), %v1273_v7, %v1270_v6 }
 0x6c3   : > { %v1133_v40 = vpop.permute.xlu1 %1132 }
 0x6c4   : > { %v1135_v37 = vmul.f32 %v2494_v8, %v1133_v40   ;;  %v2981_v8 = vld [vmem:[%s3331_s7 + $0x60] sm:$0xff] (%p603_p1) }
 0x6c5   :  { %v1276_v40 = vand.u32 (%p603_p1), 4294901760, %v2981_v8 }
 0x6c6   : > { %v1144_v42 = vmul.f32 %v1142_v41, %v1135_v37  ;;  %v1279_v41 = vand.u32 (%p603_p1), 4294901760, %v2986_v9 }
 0x6c8   : > { %1146 = vrot.lane.b32.xlu1 %v1144_v42, %s2596_s22 }
 0x73a   : > { %v1147_v43 = vpop.permute.xlu1 %1146 }
 0x73b   : > { %v1150_v44 = vsel %vm594_vm3, %v1147_v43, 0.0  ;;  %v3005_v43 = vld [vmem:[%s3331_s7 + $0x70] sm:$0xff] (%p603_p1) }
 0x73c   : > { %1151 = vadd.xlane.f32.xlu0 %v1150_v44  ;;  %v3010_v44 = vld [vmem:[%s3331_s7 + $0x78] sm:$0xff] (%p603_p1)  ;;  %v1282_v50 = vand.u32 (%p603_p1), 4294901760, %v3005_v43 }
 0x73d   :  { %v1285_v51 = vand.u32 (%p603_p1), 4294901760, %v3010_v44 }
 0x7c9   : > { %v1152_v46 = vpop.xlane.xlu0 %1151 }
 0x7ca   : > { %v1155_v47 = vadd.f32 %v1154_v45, %v1152_v46  ;;  %v3018_v46 = vsub.f32 (%p603_p1), %v2858_v62, %v1240_v0  ;;  %v3075_v62 = vpack.c.bf16 (%p603_p1), %v1285_v51, %v1282_v50 }
 0x7cc   : > { %v1162_v48 = vadd.f32 %v2720_v12, %v1155_v47  ;;  %v3023_v47 = vsub.f32 (%p603_p1), %v2863_v63, %v1243_v1  ;;  %v3337_v63 = vand.u32 (%p603_p1), 4294901760, %v3043_v53 }
 0x7ce   : > { %v1163_v49 = vmax.f32 %v1162_v48, 0.0 }
 0x7d0   : > { %1168 = vperm.xlu1 %2488, %v1163_v49   ;;  %v3033_v49 = vpack.c.bf16 (%p603_p1), %v1279_v41, %v1276_v40 }
 0x84e   :  { %605 = sbr.rel (!%p603_p1) target bundleno = 1001 (0x3e9), region = 87 }
 0x84f   : > { %v1169_v57 = vpop.permute.xlu1 %1168 }
 0x850   : > { %v1182_v58 = vmul.f32 %v1175_v55, %v1169_v57  ;;  %v1183_v59 = vmul.f32 %v1179_v56, %v1169_v57  ;;  %v3053_v55 = vsub.f32 (%p603_p1), %v2868_v14, %v1246_v3  ;;  %v1221_v56 = vld [vmem:[%s3331_s7 + $0x98] sm:$0x7] (%p603_p1)  ;;  %v3336_v14 = vand.u32 (%p603_p1), 4294901760, %v3048_v54 }
 0x851   :  { %v3092_v3 = vsub.f32 (%p603_p1), %v2884_v10, %v1252_v16 }
 0x852   : > { %v1184_v60 = vadd.f32 %v2572_v35, %v1182_v58   ;;  %v1185_v61 = vadd.f32 %v2568_v34, %v1183_v59   ;;  %v3062_v58 = vsub.f32 (%p603_p1), %v2877_v2, %v1249_v4  ;;  %v3087_v2 = vsel (%p603_p1), %vm1235_vm7, %v1221_v56, 0 }
 0x853   :  { %v1356_v4 = vand.u32 (%p603_p1), 4294901760, %v3053_v55  ;;  %v3110_v10 = vpack.c.bf16 (%p603_p1), %v3336_v14, %v3337_v63 }
 0x854   : > { %v3338_v34 = vmov %v1185_v61  ;;  %v3339_v35 = vmov %v1184_v60  ;;  %v1199_v33 = vadd.f32 (%p603_p1), %v1195_v32, %v1185_v61  ;;  %v1198_v37 = vadd.f32 (%p603_p1), %v1191_v29, %v1184_v60 }
 0x855   :  { %v2889_v34 = vld [vmem:[%s3331_s7 + $0x28] sm:$0xff]  ;;  %v2895_v35 = vpack.c.bf16 %v1243_v1, %v1240_v0  ;;  %v1342_v60 = vand.u32 4294901760, %v3018_v46  ;;  %v1349_v61 = vand.u32 4294901760, %v3023_v47  ;;  %v3084_v1 = vld [vmem:[%s3331_s7 + $0x90] sm:$0xff]  ;;  %s2606_s7 = smov [#allocation3]  }
 0x856   :  { %v1255_v17 = vand.u32 4294901760, %v2889_v34  ;;  %v1201_v11 = vmax.f32 %v1199_v33, 0.0  ;;  %v1200_v38 = vmax.f32 %v1198_v37, 0.0  ;;  %v1363_v33 = vand.u32 4294901760, %v3062_v58  ;;  %s1953_s20 = sshll.u32 %s2606_s7, 4  ;;  %s1954_s20 = int_to_ptr.vmem [resolvable:$true] %s1953_s20 }
 0x857   :  { %2205 = vmatpush1.bf16.msra.mxu1 %v2895_v35  ;;  %2295 = vmatpush1.bf16.msra.mxu0 %v2895_v35  ;;  %v1343_v29 = vsub.f32 %v3018_v46, %v1342_v60  ;;  %v1350_v32 = vsub.f32 %v3023_v47, %v1349_v61  ;;  %s2498_s21 = scalar_lea.vmem %s1954_s20, 32  ;;  %p2503_p3 = scmp.lt.s32.totalorder %s1954_s20, %s1954_s20 }
 0x858   :  { %2206 = vmatprep.subr.bf16.mxu1 %v2604_v15  ;;  %2296 = vmatprep.subr.bf16.mxu0 %v2604_v15  ;;  %v2925_v20 = vpack.c.bf16 %v1255_v17, %v1252_v16  ;;  %v1233_v13 = vsel %vm1231_vm6, %v1201_v11, 0  ;;  %v3025_v48 = vand.u32 4294901760, %v1200_v38  ;;  %v3102_v37 = vsub.f32 %v2889_v34, %v1255_v17  ;;  %p2499_p2 = scmp.ne.s32.totalorder %s1954_s20, %s2498_s21  ;;  %p2504_p4 = scmp.lt.s32.totalorder %s2498_s21, %s2498_s21 }
 0x859   :  { %v2998_v42 = vand.u32 4294901760, %v1233_v13  ;;  %v3335_v16 = vand.u32 4294901760, %v3084_v1  ;;  %v3334_v11 = vand.u32 4294901760, %v3087_v2  ;;  %v3119_v34 = vsub.f32 %v2912_v18, %v1258_v21 }
 0x85a   :  { %v3065_v59 = vsub.f32 %v1200_v38, %v3025_v48  ;;  %v3124_v17 = vsub.f32 %v2917_v19, %v1261_v22  ;;  %v1351_v56 = vand.u32 4294901760, %v1350_v32  ;;  %v1370_v19 = vand.u32 4294901760, %v3092_v3  ;;  %p2505_p5 = por %p2504_p4, %p2503_p3 }
 0x85b   :  { %2208 = vmatpush1.bf16.msra.mxu1 %v2903_v36  ;;  %2298 = vmatpush1.bf16.msra.mxu0 %v2903_v36  ;;  %v3013_v45 = vsub.f32 %v1233_v13, %v2998_v42  ;;  %v1357_v13 = vsub.f32 %v3053_v55, %v1356_v4  ;;  %v3135_v18 = vpack.c.bf16 %v3334_v11, %v3335_v16  ;;  %v1377_v21 = vand.u32 4294901760, %v3102_v37 }
 0x85c   :  { %2209 = vmatprep.subr.bf16.mxu1 %v2604_v15  ;;  %2299 = vmatprep.subr.bf16.mxu0 %v2604_v15  ;;  %v1331_v25 = vand.u32 4294901760, %v3065_v59  ;;  %v3144_v22 = vsub.f32 %v2934_v23, %v1264_v27  ;;  %v2605_v32 = vmov 1   ;;  %v1371_v23 = vsub.f32 %v3092_v3, %v1370_v19  ;;  %p2506_p6 = pnand %p2505_p5, %p2499_p2 }
 0x85d   :  { %v1325_v52 = vand.u32 4294901760, %v3013_v45  ;;  %2497 = vset.pattern.permute.xlu0 %v2605_v32  ;;  %v1358_v14 = vand.u32 4294901760, %v1357_v13  ;;  %v1378_v27 = vsub.f32 %v3102_v37, %v1377_v21  ;;  %v2327_v13 = vpack.c.bf16 %v1363_v33, %v1356_v4 }
 0x85e   :  { %v1332_v38 = vsub.f32 %v3065_v59, %v1331_v25  ;;  %1228 = vperm.xlu0 %2497, %v2720_v12   ;;  %v3163_v12 = vsub.f32 %v2959_v30, %v1270_v6 }
 0x85f   :  { %2211 = vmatpush1.bf16.msra.mxu1 %v2925_v20  ;;  %2301 = vmatpush1.bf16.msra.mxu0 %v2925_v20  ;;  %v1326_v57 = vsub.f32 %v3013_v45, %v1325_v52 }
 0x860   :  { %2212 = vmatprep.subr.bf16.mxu1 %v2604_v15  ;;  %2302 = vmatprep.subr.bf16.mxu0 %v2604_v15  ;;  %v1333_v11 = vand.u32 4294901760, %v1332_v38  ;;  %v1398_v38 = vand.u32 4294901760, %v3144_v22 }
 0x861   :  { %1712 = vmatprep.mubr.f32.mxu0 %v1325_v52  ;;  %v1327_v0 = vand.u32 4294901760, %v1326_v57  ;;  %v1344_v52 = vand.u32 4294901760, %v1343_v29  ;;  %v1364_v57 = vsub.f32 %v3062_v58, %v1363_v33  ;;  %v2324_v29 = vpack.c.bf16 %v1349_v61, %v1342_v60 }
 0x862   :  { %v3168_v60 = vsub.f32 %v2964_v31, %v1273_v7  ;;  %v3179_v31 = vsub.f32 %v2981_v8, %v1276_v40  ;;  %v3184_v7 = vsub.f32 %v2986_v9, %v1279_v41  ;;  %v3197_v9 = vsub.f32 %v3005_v43, %v1282_v50 }
 0x863   :  { %2214 = vmatpush1.bf16.msra.mxu1 %v2950_v26  ;;  %2304 = vmatpush1.bf16.msra.mxu0 %v2950_v26  ;;  %v2234_v16 = vpack.c.bf16 %v1351_v56, %v1344_v52  ;;  %v1365_v63 = vand.u32 4294901760, %v1364_v57  ;;  %v1372_v56 = vand.u32 4294901760, %v1371_v23  ;;  %v1379_v57 = vand.u32 4294901760, %v1378_v27 }
 0x864   :  { %2215 = vmatprep.subr.bf16.mxu1 %v2604_v15  ;;  %2305 = vmatprep.subr.bf16.mxu0 %v2604_v15  ;;  %v3202_v41 = vsub.f32 %v3010_v44, %v1285_v51  ;;  %v1426_v27 = vand.u32 4294901760, %v3179_v31  ;;  %v1433_v43 = vand.u32 4294901760, %v3184_v7  ;;  %v3340_v44 = vand.u32 4294901760, %v3043_v53 }
 0x865   :  { %1328 = vmatprep.mubr.f32.mxu1 %v1327_v0  ;;  %v3149_v0 = vsub.f32 %v2939_v24, %v1267_v28  ;;  %v1384_v24 = vand.u32 4294901760, %v3119_v34  ;;  %v1391_v28 = vand.u32 4294901760, %v3124_v17  ;;  %v2237_v61 = vpack.c.bf16 %v1365_v63, %v1358_v14 }
 0x866   :  { %v2330_v63 = vpack.c.bf16 %v1377_v21, %v1370_v19  ;;  %v1399_v14 = vsub.f32 %v3144_v22, %v1398_v38  ;;  %v2240_v8 = vpack.c.bf16 %v1379_v57, %v1372_v56  ;;  %v3213_v50 = vsub.f32 %v3043_v53, %v3340_v44 }
 0x867   :  { %2217 = vmatpush1.bf16.msra.mxu1 %v2972_v5  ;;  %2307 = vmatpush1.bf16.msra.mxu0 %v2972_v5  ;;  %v1405_v52 = vand.u32 4294901760, %v3149_v0  ;;  %v1385_v30 = vsub.f32 %v3119_v34, %v1384_v24  ;;  %v1392_v6 = vsub.f32 %v3124_v17, %v1391_v28  ;;  %v3341_v51 = vand.u32 4294901760, %v3048_v54 }
 0x868   :  { %2218 = vmatprep.subr.bf16.mxu1 %v2604_v15  ;;  %2308 = vmatprep.subr.bf16.mxu0 %v2604_v15  ;;  %v1400_v19 = vand.u32 4294901760, %v1399_v14  ;;  %v1440_v56 = vand.u32 4294901760, %v3197_v9  ;;  %v1447_v53 = vand.u32 4294901760, %v3202_v41 }
 0x869   :  { %v1406_v4 = vsub.f32 %v3149_v0, %v1405_v52  ;;  %v1386_v40 = vand.u32 4294901760, %v1385_v30  ;;  %v1393_v33 = vand.u32 4294901760, %v1392_v6  ;;  %v1427_v30 = vsub.f32 %v3179_v31, %v1426_v27 }
 0x86a   :  { %v1434_v6 = vsub.f32 %v3184_v7, %v1433_v43 }
 0x86b   :  { %2220 = vmatpush1.bf16.msra.mxu1 %v2994_v39  ;;  %2310 = vmatpush1.bf16.msra.mxu0 %v2994_v39  ;;  %v1407_v21 = vand.u32 4294901760, %v1406_v4  ;;  %v2243_v32 = vpack.c.bf16 %v1393_v33, %v1386_v40  ;;  %v1441_v4 = vsub.f32 %v3197_v9, %v1440_v56 }
 0x86c   :  { %2221 = vmatprep.subr.bf16.mxu1 %v2604_v15  ;;  %2311 = vmatprep.subr.bf16.mxu0 %v2604_v15 }
 0x86f   :  { %2223 = vmatpush1.bf16.msra.mxu1 %v3033_v49  ;;  %2313 = vmatpush1.bf16.msra.mxu0 %v3033_v49 }
 0x870   :  { %2224 = vmatprep.subr.bf16.mxu1 %v2604_v15  ;;  %2314 = vmatprep.subr.bf16.mxu0 %v2604_v15 }
 0x873   :  { %2226 = vmatpush1.bf16.msra.mxu1 %v3075_v62  ;;  %2316 = vmatpush1.bf16.msra.mxu0 %v3075_v62 }
 0x874   :  { %2227 = vmatprep.subr.bf16.mxu1 %v2604_v15  ;;  %2317 = vmatprep.subr.bf16.mxu0 %v2604_v15 }
 0x877   :  { %2229 = vmatpush1.bf16.msra.mxu1 %v3110_v10  ;;  %2319 = vmatpush1.bf16.msra.mxu0 %v3110_v10 }
 0x878   :  { %2230 = vmatprep.subr.bf16.mxu1 %v2604_v15  ;;  %2320 = vmatprep.subr.bf16.mxu0 %v2604_v15 }
 0x87b   :  { %2232 = vmatpush1.bf16.msra.mxu1 %v3135_v18  ;;  %2322 = vmatpush1.bf16.msra.mxu0 %v3135_v18 }
 0x87c   :  { %2233 = vmatprep.subr.bf16.mxu1 %v2604_v15  ;;  %2323 = vmatprep.subr.bf16.mxu0 %v2604_v15 }
 0x87e   :  { %1334 = vmatmul.mubr.f32.vlgmr.msra.gmra.mrb[0].mxu1 %v1333_v11  ;;  %1716 = vmatmul.mubr.f32.vlgmr.msra.gmra.mrb[0].mxu0 %v1331_v25  ;;  %v1412_v25 = vand.u32 4294901760, %v3163_v12  ;;  %v2333_v11 = vpack.c.bf16 %v1391_v28, %v1384_v24  ;;  %v3218_v24 = vsub.f32 %v3048_v54, %v3341_v51  ;;  %v2246_v28 = vpack.c.bf16 %v1407_v21, %v1400_v19 }
 0x87f   :  { %2235 = vmatpush1.bf16.msra.mxu1 %v2234_v16  ;;  %2325 = vmatpush1.bf16.msra.mxu0 %v2324_v29  ;;  %v1419_v16 = vand.u32 4294901760, %v3168_v60  ;;  %v3342_v54 = vand.u32 4294901760, %v3084_v1  ;;  %v1435_v19 = vand.u32 4294901760, %v1434_v6  ;;  %v1442_v21 = vand.u32 4294901760, %v1441_v4 }
 0x880   :  { %2236 = vmatprep.subr.bf16.mxu1 %v2604_v15  ;;  %2326 = vmatprep.subr.bf16.mxu0 %v2604_v15  ;;  %v1413_v29 = vsub.f32 %v3163_v12, %v1412_v25  ;;  %v1461_v40 = vand.u32 4294901760, %v3218_v24  ;;  %v2345_v51 = vpack.c.bf16 %v1447_v53, %v1440_v56 }
 0x881   :  { %1504 = vmatprep.mubr.f32.mxu1 %v2998_v42  ;;  %1846 = vmatprep.mubr.f32.mxu0 %v2998_v42  ;;  %v1420_v23 = vsub.f32 %v3168_v60, %v1419_v16  ;;  %v2339_v14 = vpack.c.bf16 %v1419_v16, %v1412_v25 }
 0x882   :  { %v1462_v16 = vsub.f32 %v3218_v24, %v1461_v40 }
 0x883   :  { %2238 = vmatpush1.bf16.msra.mxu1 %v2237_v61  ;;  %2328 = vmatpush1.bf16.msra.mxu0 %v2327_v13  ;;  %v2336_v61 = vpack.c.bf16 %v1405_v52, %v1398_v38  ;;  %v1414_v13 = vand.u32 4294901760, %v1413_v29  ;;  %v1421_v57 = vand.u32 4294901760, %v1420_v23  ;;  %v3229_v38 = vsub.f32 %v3084_v1, %v3342_v54 }
 0x884   :  { %2239 = vmatprep.subr.bf16.mxu1 %v2604_v15  ;;  %2329 = vmatprep.subr.bf16.mxu0 %v2604_v15  ;;  %v3343_v52 = vand.u32 4294901760, %v3087_v2  ;;  %v1448_v1 = vsub.f32 %v3202_v41, %v1447_v53 }
 0x885   :  { %v2249_v33 = vpack.c.bf16 %v1421_v57, %v1414_v13  ;;  %v1468_v23 = vand.u32 4294901760, %v3229_v38 }
 0x887   :  { %2241 = vmatpush1.bf16.msra.mxu1 %v2240_v8  ;;  %2331 = vmatpush1.bf16.msra.mxu0 %v2330_v63  ;;  %v3234_v63 = vsub.f32 %v3087_v2, %v3343_v52  ;;  %v1454_v8 = vand.u32 4294901760, %v3213_v50  ;;  %v2342_v2 = vpack.c.bf16 %v1433_v43, %v1426_v27  ;;  %v1463_v43 = vand.u32 4294901760, %v1462_v16 }
 0x888   :  { %2242 = vmatprep.subr.bf16.mxu1 %v2604_v15  ;;  %2332 = vmatprep.subr.bf16.mxu0 %v2604_v15  ;;  %v2264_v52 = vpack.c.bf16 %v3023_v47, %v3018_v46  ;;  %v2270_v46 = vpack.c.bf16 %v3102_v37, %v3092_v3 }
 0x889   :  { %v1455_v25 = vsub.f32 %v3213_v50, %v1454_v8  ;;  %v1475_v44 = vand.u32 4294901760, %v3234_v63 }
 0x88b   :  { %2244 = vmatpush1.bf16.msra.mxu1 %v2243_v32  ;;  %2334 = vmatpush1.bf16.msra.mxu0 %v2333_v11  ;;  %v1428_v11 = vand.u32 4294901760, %v1427_v30  ;;  %v1449_v32 = vand.u32 4294901760, %v1448_v1  ;;  %v1476_v13 = vsub.f32 %v3234_v63, %v1475_v44  ;;  %v2348_v30 = vpack.c.bf16 %v1461_v40, %v1454_v8 }
 0x88c   :  { %2245 = vmatprep.subr.bf16.mxu1 %v2604_v15  ;;  %2335 = vmatprep.subr.bf16.mxu0 %v2604_v15  ;;  %v2351_v53 = vpack.c.bf16 %v1475_v44, %v1468_v23 }
 0x88d   :  { %v2252_v29 = vpack.c.bf16 %v1435_v19, %v1428_v11  ;;  %v2255_v27 = vpack.c.bf16 %v1449_v32, %v1442_v21  ;;  %v1477_v54 = vand.u32 4294901760, %v1476_v13 }
 0x88f   :  { %2247 = vmatpush1.bf16.msra.mxu1 %v2246_v28  ;;  %2337 = vmatpush1.bf16.msra.mxu0 %v2336_v61  ;;  %v1456_v28 = vand.u32 4294901760, %v1455_v25  ;;  %v1469_v61 = vsub.f32 %v3229_v38, %v1468_v23 }
 0x890   :  { %2248 = vmatprep.subr.bf16.mxu1 %v2604_v15  ;;  %2338 = vmatprep.subr.bf16.mxu0 %v2604_v15 }
 0x891   :  { %v2258_v57 = vpack.c.bf16 %v1463_v43, %v1456_v28  ;;  %v1470_v6 = vand.u32 4294901760, %v1469_v61 }
 0x893   :  { %2250 = vmatpush1.bf16.msra.mxu1 %v2249_v33  ;;  %2340 = vmatpush1.bf16.msra.mxu0 %v2339_v14  ;;  %v2261_v56 = vpack.c.bf16 %v1477_v54, %v1470_v6  ;;  %v2267_v14 = vpack.c.bf16 %v3062_v58, %v3053_v55 }
 0x894   :  { %2251 = vmatprep.subr.bf16.mxu1 %v2604_v15  ;;  %2341 = vmatprep.subr.bf16.mxu0 %v2604_v15 }
 0x897   :  { %2253 = vmatpush1.bf16.msra.mxu1 %v2252_v29  ;;  %2343 = vmatpush1.bf16.msra.mxu0 %v2342_v2 }
 0x898   :  { %2254 = vmatprep.subr.bf16.mxu1 %v2604_v15  ;;  %2344 = vmatprep.subr.bf16.mxu0 %v2604_v15 }
 0x89b   :  { %2256 = vmatpush1.bf16.msra.mxu1 %v2255_v27  ;;  %2346 = vmatpush1.bf16.msra.mxu0 %v2345_v51 }
 0x89c   :  { %2257 = vmatprep.subr.bf16.mxu1 %v2604_v15  ;;  %2347 = vmatprep.subr.bf16.mxu0 %v2604_v15 }
 0x89f   :  { %2259 = vmatpush1.bf16.msra.mxu1 %v2258_v57  ;;  %2349 = vmatpush1.bf16.msra.mxu0 %v2348_v30 }
 0x8a0   :  { %2260 = vmatprep.subr.bf16.mxu1 %v2604_v15  ;;  %2350 = vmatprep.subr.bf16.mxu0 %v2604_v15 }
 0x8a3   :  { %2262 = vmatpush1.bf16.msra.mxu1 %v2261_v56  ;;  %2352 = vmatpush1.bf16.msra.mxu0 %v2351_v53 }
 0x8a4   :  { %2263 = vmatprep.subr.bf16.mxu1 %v2604_v15  ;;  %2353 = vmatprep.subr.bf16.mxu0 %v2604_v15 }
 0x8a6   :  { %1506 = vmatmul.mubr.f32.vlgmr.msra.gmra.mrb[0].mxu1 %v3025_v48  ;;  %1848 = vmatmul.mubr.f32.vlgmr.msra.gmra.mrb[0].mxu0 %v3025_v48 }
 0x8a7   :  { %2265 = vmatpush1.bf16.msra.mxu1 %v2264_v52  ;;  %2355 = vmatpush1.bf16.msra.mxu0 %v2895_v35  ;;  %v2273_v35 = vpack.c.bf16 %v3124_v17, %v3119_v34 }
 0x8a8   :  { %2266 = vmatprep.subr.bf16.mxu1 %v2604_v15  ;;  %2356 = vmatprep.subr.bf16.mxu0 %v2604_v15 }
 0x8a9   :  { %1617 = vmatprep.mubr.f32.mxu1 %v3013_v45  ;;  %1938 = vmatprep.mubr.f32.mxu0 %v2998_v42  ;;  %v2291_v42 = vpack.c.bf16 %v3234_v63, %v3229_v38 }
 0x8ab   :  { %2268 = vmatpush1.bf16.msra.mxu1 %v2267_v14  ;;  %2358 = vmatpush1.bf16.msra.mxu0 %v2903_v36  ;;  %v2276_v36 = vpack.c.bf16 %v3149_v0, %v3144_v22 }
 0x8ac   :  { %2269 = vmatprep.subr.bf16.mxu1 %v2604_v15  ;;  %2359 = vmatprep.subr.bf16.mxu0 %v2604_v15 }
 0x8af   :  { %2271 = vmatpush1.bf16.msra.mxu1 %v2270_v46  ;;  %2361 = vmatpush1.bf16.msra.mxu0 %v2925_v20  ;;  %v2279_v20 = vpack.c.bf16 %v3168_v60, %v3163_v12 }
 0x8b0   :  { %2272 = vmatprep.subr.bf16.mxu1 %v2604_v15  ;;  %2362 = vmatprep.subr.bf16.mxu0 %v2604_v15 }
 0x8b3   :  { %2274 = vmatpush1.bf16.msra.mxu1 %v2273_v35  ;;  %2364 = vmatpush1.bf16.msra.mxu0 %v2950_v26  ;;  %v2282_v26 = vpack.c.bf16 %v3184_v7, %v3179_v31 }
 0x8b4   :  { %2275 = vmatprep.subr.bf16.mxu1 %v2604_v15  ;;  %2365 = vmatprep.subr.bf16.mxu0 %v2604_v15 }
 0x8b7   :  { %2277 = vmatpush1.bf16.msra.mxu1 %v2276_v36  ;;  %2367 = vmatpush1.bf16.msra.mxu0 %v2972_v5  ;;  %v2285_v5 = vpack.c.bf16 %v3202_v41, %v3197_v9 }
 0x8b8   :  { %2278 = vmatprep.subr.bf16.mxu1 %v2604_v15  ;;  %2368 = vmatprep.subr.bf16.mxu0 %v2604_v15 }
 0x8bb   :  { %2280 = vmatpush1.bf16.msra.mxu1 %v2279_v20  ;;  %2370 = vmatpush1.bf16.msra.mxu0 %v2994_v39  ;;  %v2288_v39 = vpack.c.bf16 %v3218_v24, %v3213_v50 }
 0x8bc   :  { %2281 = vmatprep.subr.bf16.mxu1 %v2604_v15  ;;  %2371 = vmatprep.subr.bf16.mxu0 %v2604_v15 }
 0x8bf   :  { %2283 = vmatpush1.bf16.msra.mxu1 %v2282_v26  ;;  %2373 = vmatpush1.bf16.msra.mxu0 %v3033_v49 }
 0x8c0   :  { %2284 = vmatprep.subr.bf16.mxu1 %v2604_v15  ;;  %2374 = vmatprep.subr.bf16.mxu0 %v2604_v15 }
 0x8c3   :  { %2286 = vmatpush1.bf16.msra.mxu1 %v2285_v5  ;;  %2376 = vmatpush1.bf16.msra.mxu0 %v3075_v62 }
 0x8c4   :  { %2287 = vmatprep.subr.bf16.mxu1 %v2604_v15  ;;  %2377 = vmatprep.subr.bf16.mxu0 %v2604_v15 }
 0x8c7   :  { %2289 = vmatpush1.bf16.msra.mxu1 %v2288_v39  ;;  %2379 = vmatpush1.bf16.msra.mxu0 %v3110_v10 }
 0x8c8   :  { %2290 = vmatprep.subr.bf16.mxu1 %v2604_v15  ;;  %2380 = vmatprep.subr.bf16.mxu0 %v2604_v15 }
 0x8cb   :  { %2292 = vmatpush1.bf16.msra.mxu1 %v2291_v42  ;;  %2382 = vmatpush1.bf16.msra.mxu0 %v3135_v18 }
 0x8ce   :  { %1620 = vmatmul.mubr.f32.vlgmr.msra.gmra.mrb[0].mxu1 %v3065_v59  ;;  %1940 = vmatmul.mubr.f32.vlgmr.msra.gmra.mrb[0].mxu0 %v3025_v48 }
 0x8dd   :  { %v1229_v45 = vpop.permute.xlu0 %1228 }
 0x9a1   :  { %v1621_v47 = vpop.f32.mrb[0].mxu1  ;;  %v1941_v49 = vpop.f32.mrb[0].mxu0 }
 0x9a2   :  { %v2383_v55 = vadd.f32 %v1621_v47, %v1229_v45  ;;  %v1623_v58 = vpop.f32.mrb[1].mxu1  ;;  %v1943_v62 = vpop.f32.mrb[1].mxu0 }
 0x9a4   :  { %v2384_v3 = vadd.f32 %v2383_v55, %v1941_v49 }
 0x9a6   :  { %1946 = vst.msk [vmem:[#allocation3] sm:$0x3] %vm1945_vm8, %v2384_v3 }
 0x9a7   :  { %2509 = shalt.err (!%p2506_p6)
}
 0x9a8   :  { %s2510_s24 = scalar_lea.hbm %s3333_s9, 32 }
 0x9a9   :  { %p2511_p7 = scmp.ne.s32.totalorder %s3333_s9, %s2510_s24  ;;  %p2514_p8 = scmp.lt.u32.totalorder %s2510_s24, %s3333_s9 }
 0x9ab   :  { %p2516_p9 = pnand %p2514_p8, %p2511_p7 }
 0x9ad   :  { %2519 = shalt.err (!%p2516_p9)
}
 0x9ae   :  { %1956 = dma.vmem_to_hbm [thread:$0]  %s1954_s20, 32, %s3333_s9, [#allocation4]  }
 0x9af   :  { %2552 = dma.done.wait [#allocation4], 32  }
 0x9b0   :  { %2553 = vsyncadd [#allocation4], 4294967264 }
 0x9b1   :  { %1960 = vsyncpa [#allocation4], 1 }

</bundles_post_ra>
